<compile_context>
chip_gen: v7x
topology: tpu7x:2x2x1
jax: 0.10.0
libtpu: 0.0.40
codegen_flags: <defaults>
</compile_context>

<pallas_src>
import functools

import jax
import jax.numpy as jnp
from jax.experimental import pallas as pl
from jax.experimental.pallas import tpu as pltpu

KH = KW = 3
BN_EPS = 1e-5


def _round_up(x, m):
    return (x + m - 1) // m * m


# ---------------------------------------------------------------------------
# Pass 1 kernels: fused im2col matmul + per-tile BN partial sums.
# ---------------------------------------------------------------------------
def _stats_kernel(p_ref, w_ref, sum_ref, sq_ref):
    """Recompute path: only the tiny stats go back to HBM."""
    acc = jnp.dot(p_ref[...], w_ref[...], preferred_element_type=jnp.float32)
    sum_ref[0] = jnp.sum(acc, axis=0, keepdims=True)
    sq_ref[0] = jnp.sum(acc * acc, axis=0, keepdims=True)


def _conv_stats_kernel(p_ref, w_ref, conv_ref, sum_ref, sq_ref):
    """Intermediate path: additionally spill the conv tile to HBM in bf16."""
    acc = jnp.dot(p_ref[...], w_ref[...], preferred_element_type=jnp.float32)
    conv_ref[...] = acc.astype(conv_ref.dtype)
    sum_ref[0] = jnp.sum(acc, axis=0, keepdims=True)
    sq_ref[0] = jnp.sum(acc * acc, axis=0, keepdims=True)


# ---------------------------------------------------------------------------
# Pass 2 kernels: (re)build conv tile, folded BN scale/shift + ReLU, store.
# ---------------------------------------------------------------------------
def _store_out(o_ref, y, channel_major):
    if channel_major:
        # [T, C_pad] -> [C_pad, T] on the XLU (free filler on a mem-bound kernel),
        # keep only the real channel sublanes -> lane-dense, contiguous store.
        o_ref[...] = jnp.transpose(y)[: o_ref.shape[0], :]
    else:
        o_ref[...] = y


def _matmul_bn_relu_kernel(p_ref, w_ref, scale_ref, shift_ref, o_ref, *, channel_major):
    acc = jnp.dot(p_ref[...], w_ref[...], preferred_element_type=jnp.float32)
    y = jnp.maximum(acc * scale_ref[...] + shift_ref[...], 0.0)
    _store_out(o_ref, y, channel_major)


def _bn_relu_kernel(conv_ref, scale_ref, shift_ref, o_ref, *, channel_major):
    y = conv_ref[...].astype(jnp.float32)
    y = jnp.maximum(y * scale_ref[...] + shift_ref[...], 0.0)
    _store_out(o_ref, y, channel_major)


# ---------------------------------------------------------------------------
# Wrapper
# ---------------------------------------------------------------------------
def _vmem_limit_bytes():
    # v7x has 64 MiB VMEM per TensorCore -> stay at <=48 MiB scoped; v5e/v6e
    # (128 MiB) can use 64 MiB.
    try:
        cap = pltpu.get_tpu_info().vmem_capacity_bytes
    except Exception:
        cap = 64 * 1024 * 1024
    return int(min(cap * 3 // 4, 64 * 1024 * 1024))


def _fit_tile_rows(tile_rows, k_pad, c_pad, vmem_limit):
    def per_step(t):
        return (2 * t * k_pad * 2        # bf16 patch tile, double buffered
                + 2 * k_pad * c_pad * 2  # bf16 weight block
                + 2 * t * c_pad * 4      # result / conv / output tile
                + 2 * t * c_pad * 4)     # f32 accumulator + epilogue temporaries
    while tile_rows > 128 and per_step(tile_rows) > (vmem_limit * 3) // 4:
        tile_rows -= 128
    return tile_rows


def conv_bn_relu(x_nchw, w_oihw, bias, gamma, beta, *, tile_rows=512):
    """Forward of ConvBnReLU.  x: [N, Cin, H, W], w: [Cout, Cin, 3, 3]."""
    del bias  # exact no-op under train-mode BN (batch mean removes per-channel constants)
    # TODO(synk): fold the conv bias into the BN shift if eval-mode/running-stats BN is needed.

    N, Cin, H, W = x_nchw.shape
    Cout = w_oihw.shape[0]
    assert w_oihw.shape[1:] == (Cin, KH, KW)

    K = KH * KW * Cin
    K_pad = _round_up(K, 16)       # bf16 sublane granularity only (no 128 pad)
    C_pad = _round_up(Cout, 128)   # lane-dense matmul N dim (weights are tiny)
    R = N * H * W

    vmem_limit = _vmem_limit_bytes()
    tile_rows = max(128, _round_up(int(tile_rows), 128))
    tile_rows = min(tile_rows, _round_up(R, 128))
    tile_rows = _fit_tile_rows(tile_rows, K_pad, C_pad, vmem_limit)
    R_pad = _round_up(R, tile_rows)
    num_tiles = R_pad // tile_rows

    # Output layout: channel-major when Cout is not already lane-dense, so only
    # the real channels are written (lane dim = tile_rows, a multiple of 128).
    channel_major = (Cout % 128) != 0
    C_out_store = _round_up(Cout, 8) if channel_major else C_pad

    # Recompute the matmul in pass 2 when re-reading the bf16 patches is cheaper
    # than writing + re-reading a bf16 conv intermediate.
    recompute = (2 * K_pad) <= (4 * C_pad)

    # ---- wrapper-side im2col (bf16, K padded only to 16) ---------------------
    # TODO(synk): move to in-kernel halo im2col for very large activations.
    x_nhwc = jnp.transpose(x_nchw, (0, 2, 3, 1)).astype(jnp.bfloat16)
    x_p = jnp.pad(x_nhwc, ((0, 0), (1, 1), (1, 1), (0, 0)))
    taps = [x_p[:, ky:ky + H, kx:kx + W, :] for ky in range(KH) for kx in range(KW)]
    patches = jnp.concatenate(taps, axis=-1).reshape(R, K)
    patches = jnp.pad(patches, ((0, R_pad - R), (0, K_pad - K)))

    w_kc = jnp.transpose(w_oihw, (2, 3, 1, 0)).reshape(K, Cout)
    w_kc = jnp.pad(w_kc, ((0, K_pad - K), (0, C_pad - Cout))).astype(jnp.bfloat16)

    cparams = pltpu.CompilerParams(
        # Row tiles are independent -> shard across the two TensorCores on v7x.
        # (If a v7x trace shows one idle core, switch to pltpu.CORE_PARALLEL.)
        dimension_semantics=("parallel",),
        vmem_limit_bytes=vmem_limit,
    )

    p_spec = pl.BlockSpec((tile_rows, K_pad), lambda i: (i, 0))
    w_spec = pl.BlockSpec((K_pad, C_pad), lambda i: (0, 0))
    stat_spec = pl.BlockSpec((1, 1, C_pad), lambda i: (i, 0, 0))
    stat_shape = jax.ShapeDtypeStruct((num_tiles, 1, C_pad), jnp.float32)

    flops_mm = 2 * R_pad * K_pad * C_pad
    patch_bytes = R_pad * K_pad * 2
    w_bytes = K_pad * C_pad * 2
    stat_bytes = 2 * num_tiles * C_pad * 4
    conv_bytes = R_pad * C_pad * 2
    out_bytes = R_pad * C_out_store * 4

    # ---- pass 1: conv matmul + per-tile BN partials ---------------------------
    if recompute:
        sums, sqs = pl.pallas_call(
            _stats_kernel,
            grid=(num_tiles,),
            in_specs=[p_spec, w_spec],
            out_specs=(stat_spec, stat_spec),
            out_shape=(stat_shape, stat_shape),
            compiler_params=cparams,
            cost_estimate=pl.CostEstimate(
                flops=flops_mm, transcendentals=0,
                bytes_accessed=patch_bytes + w_bytes + stat_bytes),
        )(patches, w_kc)
        conv_bf16 = None
    else:
        conv_bf16, sums, sqs = pl.pallas_call(
            _conv_stats_kernel,
            grid=(num_tiles,),
            in_specs=[p_spec, w_spec],
            out_specs=(pl.BlockSpec((tile_rows, C_pad), lambda i: (i, 0)),
                       stat_spec, stat_spec),
            out_shape=(jax.ShapeDtypeStruct((R_pad, C_pad), jnp.bfloat16),
                       stat_shape, stat_shape),
            compiler_params=cparams,
            cost_estimate=pl.CostEstimate(
                flops=flops_mm, transcendentals=0,
                bytes_accessed=patch_bytes + w_bytes + conv_bytes + stat_bytes),
        )(patches, w_kc)

    # ---- BN finalize hoisted out of the per-tile kernel (tiny global reduce) ---
    # TODO(synk): E[x^2]-E[x]^2 in f32 loses precision when |mean| >> std; switch
    # to a shifted two-pass variance if that regime shows up.
    inv_count = jnp.float32(1.0 / R)
    mean = jnp.sum(sums[:, 0, :], axis=0) * inv_count
    ex2 = jnp.sum(sqs[:, 0, :], axis=0) * inv_count
    var = jnp.maximum(ex2 - mean * mean, 0.0)
    inv_std = jax.lax.rsqrt(var + BN_EPS)
    gamma_p = jnp.pad(gamma.astype(jnp.float32), (0, C_pad - Cout))
    beta_p = jnp.pad(beta.astype(jnp.float32), (0, C_pad - Cout))
    scale = (gamma_p * inv_std).reshape(1, C_pad)
    shift = (beta_p - mean * gamma_p * inv_std).reshape(1, C_pad)

    # ---- pass 2: (re)build conv tile, fused scale/shift + ReLU, store ----------
    vec_spec = pl.BlockSpec((1, C_pad), lambda i: (0, 0))
    if channel_major:
        out_shape = jax.ShapeDtypeStruct((C_out_store, R_pad), jnp.float32)
        out_spec = pl.BlockSpec((C_out_store, tile_rows), lambda i: (0, i))
    else:
        out_shape = jax.ShapeDtypeStruct((R_pad, C_pad), jnp.float32)
        out_spec = pl.BlockSpec((tile_rows, C_pad), lambda i: (i, 0))

    if recompute:
        out_flat = pl.pallas_call(
            functools.partial(_matmul_bn_relu_kernel, channel_major=channel_major),
            grid=(num_tiles,),
            in_specs=[p_spec, w_spec, vec_spec, vec_spec],
            out_specs=out_spec,
            out_shape=out_shape,
            compiler_params=cparams,
            cost_estimate=pl.CostEstimate(
                flops=flops_mm + 3 * R_pad * C_pad, transcendentals=0,
                bytes_accessed=patch_bytes + w_bytes + out_bytes),
        )(patches, w_kc, scale, shift)
    else:
        out_flat = pl.pallas_call(
            functools.partial(_bn_relu_kernel, channel_major=channel_major),
            grid=(num_tiles,),
            in_specs=[pl.BlockSpec((tile_rows, C_pad), lambda i: (i, 0)),
                      vec_spec, vec_spec],
            out_specs=out_spec,
            out_shape=out_shape,
            compiler_params=cparams,
            cost_estimate=pl.CostEstimate(
                flops=3 * R_pad * C_pad, transcendentals=0,
                bytes_accessed=conv_bytes + out_bytes),
        )(conv_bf16, scale, shift)

    if channel_major:
        out = out_flat[:Cout, :R].reshape(Cout, N, H, W)
        return jnp.transpose(out, (1, 0, 2, 3))
    out = out_flat[:R, :Cout].reshape(N, H, W, Cout)
    return jnp.transpose(out, (0, 3, 1, 2))


# ---------------------------------------------------------------------------
# Reference + test
# ---------------------------------------------------------------------------
def _reference(x, w, b, gamma, beta):
    """Pure-JAX f32 reference of the PyTorch module (train-mode BN)."""
    y = jax.lax.conv_general_dilated(
        x, w, window_strides=(1, 1), padding=((1, 1), (1, 1)),
        dimension_numbers=("NCHW", "OIHW", "NCHW"),
        preferred_element_type=jnp.float32)
    y = y + b.reshape(1, -1, 1, 1)
    mean = jnp.mean(y, axis=(0, 2, 3), keepdims=True)
    var = jnp.mean((y - mean) ** 2, axis=(0, 2, 3), keepdims=True)
    y = (y - mean) * jax.lax.rsqrt(var + BN_EPS)
    y = y * gamma.reshape(1, -1, 1, 1) + beta.reshape(1, -1, 1, 1)
    return jnp.maximum(y, 0.0)


def _run_case(key, n, cin, h, w_sp, cout, tile_rows, tol):
    kx, kw, kb, kg, kbt = jax.random.split(key, 5)
    x = jax.random.normal(kx, (n, cin, h, w_sp), dtype=jnp.float32)
    fan_in = cin * KH * KW
    bound = 1.0 / (fan_in ** 0.5)
    w = jax.random.uniform(kw, (cout, cin, KH, KW), jnp.float32, -bound, bound)
    b = jax.random.uniform(kb, (cout,), jnp.float32, -bound, bound)
    gamma = 1.0 + 0.1 * jax.random.normal(kg, (cout,), jnp.float32)
    beta = 0.1 * jax.random.normal(kbt, (cout,), jnp.float32)

    out = conv_bn_relu(x, w, b, gamma, beta, tile_rows=tile_rows)
    out = jax.block_until_ready(out)
    assert out.shape == (n, cout, h, w_sp)

    ref = _reference(x, w, b, gamma, beta)
    err = float(jnp.max(jnp.abs(out - ref)))
    assert err < tol, f"mismatch vs reference: max abs err {err}"


if __name__ == "__main__":
    key = jax.random.PRNGKey(0)
    k1, k2 = jax.random.split(key)

    # Case 1 (primary): small Cin/Cout -> recompute path, channel-major output,
    # two row tiles exercise the cross-tile BN reduce.
    _run_case(k1, n=2, cin=4, h=16, w_sp=16, cout=8, tile_rows=256, tol=5e-2)

    # Case 2: larger Cin -> bf16-intermediate path (2*K_pad > 4*C_pad).
    _run_case(k2, n=2, cin=32, h=16, w_sp=16, cout=16, tile_rows=256, tol=8e-2)

    print("KERNEL_OK")
</pallas_src>

<mosaic_0001>
module attributes {stable_mosaic.version = 11 : i64} {
  func.func @_stats_kernel(%arg0: i32, %arg1: memref<256x48xbf16, #tpu.memory_space<vmem>>, %arg2: memref<48x128xbf16, #tpu.memory_space<vmem>>, %arg3: memref<1x1x128xf32, #tpu.memory_space<vmem>>, %arg4: memref<1x1x128xf32, #tpu.memory_space<vmem>>) attributes {dimension_semantics = [#tpu.dimension_semantics<parallel>], iteration_bounds = array<i64: 2>, scalar_prefetch = 0 : i64, scratch_operands = 0 : i64, tpu.core_type = #tpu.core_type<tc>, window_params = [{transform_indices = @transform_0, window_bounds = array<i64: 256, 48>}, {pipeline_mode = #tpu.pipeline_mode<synchronous>, transform_indices = @transform_1, window_bounds = array<i64: 48, 128>}, {transform_indices = @transform_2, window_bounds = array<i64: 1, 1, 128>}, {transform_indices = @transform_3, window_bounds = array<i64: 1, 1, 128>}]} {
    %c0 = arith.constant 0 : index
    %c0_0 = arith.constant 0 : index
    %0 = vector.load %arg1[%c0, %c0_0] : memref<256x48xbf16, #tpu.memory_space<vmem>>, vector<256x48xbf16>
    %c0_1 = arith.constant 0 : index
    %c0_2 = arith.constant 0 : index
    %1 = vector.load %arg2[%c0_1, %c0_2] : memref<48x128xbf16, #tpu.memory_space<vmem>>, vector<48x128xbf16>
    %cst = arith.constant dense<0.000000e+00> : vector<256x128xf32>
    %2 = tpu.matmul %0, %1, %cst {dimension_numbers = #tpu.dot_dimension_numbers<[1], [0], [0], [1], [0, 0, 1, 1], [], []>} : vector<256x48xbf16>, vector<48x128xbf16>, vector<256x128xf32> -> vector<256x128xf32>
    %cst_3 = arith.constant dense<0.000000e+00> : vector<128xf32>
    %3 = vector.multi_reduction <add>, %2, %cst_3 [0] : vector<256x128xf32> to vector<128xf32>
    %4 = vector.shape_cast %3 : vector<128xf32> to vector<1x128xf32>
    %c0_4 = arith.constant 0 : index
    %c0_5 = arith.constant 0 : index
    %c0_6 = arith.constant 0 : index
    %5 = vector.load %arg3[%c0_4, %c0_5, %c0_6] : memref<1x1x128xf32, #tpu.memory_space<vmem>>, vector<1x1x128xf32>
    %6 = vector.shape_cast %5 : vector<1x1x128xf32> to vector<1x128xf32>
    %7 = vector.shape_cast %4 : vector<1x128xf32> to vector<1x1x128xf32>
    tpu.vector_store %arg3[%c0_4, %c0_5, %c0_6], %7 {strides = array<i32>} : memref<1x1x128xf32, #tpu.memory_space<vmem>>, vector<1x1x128xf32>,
    %8 = arith.mulf %2, %2 : vector<256x128xf32>
    %cst_7 = arith.constant dense<0.000000e+00> : vector<128xf32>
    %9 = vector.multi_reduction <add>, %8, %cst_7 [0] : vector<256x128xf32> to vector<128xf32>
    %10 = vector.shape_cast %9 : vector<128xf32> to vector<1x128xf32>
    %c0_8 = arith.constant 0 : index
    %c0_9 = arith.constant 0 : index
    %c0_10 = arith.constant 0 : index
    %11 = vector.load %arg4[%c0_8, %c0_9, %c0_10] : memref<1x1x128xf32, #tpu.memory_space<vmem>>, vector<1x1x128xf32>
    %12 = vector.shape_cast %11 : vector<1x1x128xf32> to vector<1x128xf32>
    %13 = vector.shape_cast %10 : vector<1x128xf32> to vector<1x1x128xf32>
    tpu.vector_store %arg4[%c0_8, %c0_9, %c0_10], %13 {strides = array<i32>} : memref<1x1x128xf32, #tpu.memory_space<vmem>>, vector<1x1x128xf32>,
    return
  }
  func.func @transform_0(%arg0: i32) -> (i32, i32) {
    %c0_i32 = arith.constant 0 : i32
    %c0_i32_0 = arith.constant 0 : i32
    return %arg0, %c0_i32 : i32, i32
  }
  func.func @transform_1(%arg0: i32) -> (i32, i32) {
    %c0_i32 = arith.constant 0 : i32
    %c0_i32_0 = arith.constant 0 : i32
    %c0_i32_1 = arith.constant 0 : i32
    return %c0_i32, %c0_i32_0 : i32, i32
  }
  func.func @transform_2(%arg0: i32) -> (i32, i32, i32) {
    %c0_i32 = arith.constant 0 : i32
    %c0_i32_0 = arith.constant 0 : i32
    %c0_i32_1 = arith.constant 0 : i32
    return %arg0, %c0_i32, %c0_i32_0 : i32, i32, i32
  }
  func.func @transform_3(%arg0: i32) -> (i32, i32, i32) {
    %c0_i32 = arith.constant 0 : i32
    %c0_i32_0 = arith.constant 0 : i32
    %c0_i32_1 = arith.constant 0 : i32
    return %arg0, %c0_i32, %c0_i32_0 : i32, i32, i32
  }
}

</mosaic_0001>

<bundles_post_ra>
// kernel: tpu_custom_call.1
= control target key start
LH: loop header
LB: loop body
LE: loop exit
PB: predicated region body
PF: predicated region fallthrough
CT: control target
= control target key end

     0   :  { %9 = vsyncpa [#allocation3], 0  ;;  %s1247_s0 = inlined_call_operand.vmem [shape: bf16[512,48], index: 0, kind: input, shape index: {}]   ;;  %s1248_s1 = inlined_call_operand.vmem [shape: bf16[48,128], index: 1, kind: input, shape index: {}]   ;;  %s1249_s2 = inlined_call_operand.hbm [shape: f32[2,1,128], index: 2, kind: output, shape index: {0}]   ;;  %s1250_s3 = inlined_call_operand.hbm [shape: f32[2,1,128], index: 3, kind: output, shape index: {1}]  }
   0x1   :  { %11 = vsyncpa [#allocation3 + $0x1], 0 }
   0x2   :  { %12 = vsyncpa [#allocation5], 0 }
   0x3   :  { %14 = vsyncpa [#allocation5 + $0x1], 0  ;;  %s1037_s12 = smov 0   ;;  %s1039_s13 = smov 0  }
   0x4   :  { %s1041_s14 = smov 0   ;;  %s1043_s15 = smov 0  }
   0x5 LB: > { %s1058_s16 = sadd.s32 4294967295, %s1013_s15   ;;  %s748_s17 = sadd.s32 4294967294, %s1013_s15   ;;  %s1013_s15 = sphi %s1043_s15, %s1256_s15   ;;  %s1009_s14 = sphi %s1041_s14, %s1255_s14   ;;  %s1005_s13 = sphi %s1039_s13, %s1254_s13   ;;  %s1001_s12 = sphi %s1037_s12, %s1253_s12  }
   0x6   : > { %s1062_s18 = sadd.s32 1, %s1013_s15   ;;  %s74_s19 = sadd.s32 1, %s1009_s14 }
   0x7   : > { %s71_s20 = ssub.s32 %s1013_s15, %s1062_s18  ;;  %p84_p0 = scmp.ne.s32.totalorder %s1009_s14, %s1005_s13 }
   0x8   : > { %p72_p1 = scmp.eq.s32.totalorder %s71_s20, 0  ;;  %p85_p2 = scmp.eq.s32.totalorder %s1058_s16, 1 }
   0x9   : > { %p90_p3 = scmp.ne.s32.totalorder %s1005_s13, %s1001_s12  ;;  %p91_p4 = scmp.eq.s32.totalorder %s748_s17, 1 }
   0xa   : > { %s1073_s21 = scalar_select %p72_p1, %s1009_s14, %s74_s19  }
   0xb   : > { %p1075_p5 = por %p85_p2, %p84_p0  ;;  %p1079_p6 = por %p91_p4, %p90_p3 }
   0xc   : > { %p751_p7 = scmp.ge.s32.totalorder %s1013_s15, 1  ;;  %p147_p8 = scmp.lt.s32.totalorder %s1013_s15, 3 }
   0xe   : > { %p148_p9 = pnand %p751_p7, %p147_p8 }
   0xf   : > { %v900_v0 = vld [vmem:[%s1248_s1] sm:$0xff] (!%p148_p9)   ;;  %s752_s26 = sshll.u32 (!%p148_p9), %s1058_s16, 5  ;;  %v901_v1 = vld [vmem:[%s1248_s1 + $0x8] sm:$0xff] (!%p148_p9)   ;;  %v902_v2 = vld [vmem:[%s1248_s1 + $0x10] sm:$0xff] (!%p148_p9)   ;;  %vm317_vm0 = vcmask (!%p148_p9), 392192   ;;  %s1163_s8 = sand.u32 (!%p148_p9), 1, %s1005_s13  }
  0x10   : > { %151 = sbr.rel (%p148_p9) target bundleno = 354 (0x162), region = 28  ;;  %p175_p10 = scmp.lt.s32.totalorder (!%p148_p9), %s752_s26, 63  ;;  %812 = vmatprep.subr.bf16.mxu0 (!%p148_p9), %v900_v0  ;;  %850 = vmatprep.subr.bf16.mxu1 (!%p148_p9), %v900_v0 }
  0x11   : > { %813 = vmatpush3.bf16.msra.mxu0 (!%p148_p9), %v900_v0  ;;  %853 = vmatpush3.bf16.msra.mxu1 (!%p148_p9), %v900_v0  ;;  %s789_s9 = sshll.u32 (!%p148_p9), %s1058_s16, 4  ;;  %s167_s10 = scalar_lea.vmem (!%p148_p9), [#allocation2], %s1163_s8 }
  0x12   : > { %814 = vmatprep.subr.bf16.mxu0 (!%p148_p9), %v901_v1  ;;  %851 = vmatprep.subr.bf16.mxu1 (!%p148_p9), %v901_v1  ;;  %s652_s11 = sshll.u32 (!%p148_p9), %s167_s10, 4  ;;  %s173_s17 = scalar_lea.vmem (!%p148_p9), [#allocation4], %s1163_s8  ;;  %s1175_s11 = int_to_ptr.vmem [resolvable:$true] %s652_s11 }
  0x13   : > { %s665_s19 = sshll.u32 (!%p148_p9), %s173_s17, 4  ;;  %s1173_s25 = scalar_lea.hbm (!%p148_p9), %s1249_s2, %s789_s9  ;;  %s1182_s19 = int_to_ptr.vmem [resolvable:$true] %s665_s19 }
  0x14   : > { %s1180_s27 = scalar_lea.hbm (!%p148_p9), %s1250_s3, %s789_s9  ;;  %s636_s28 = scalar_lea.sflag (!%p148_p9), [#allocation3], %s1163_s8 }
  0x15   : > { %815 = vmatpush3.bf16.msra.mxu0 (!%p148_p9), %v901_v1  ;;  %854 = vmatpush3.bf16.msra.mxu1 (!%p148_p9), %v901_v1  ;;  %s919_s29 = scalar_lea.vmem (!%p148_p9), %s1175_s11, 16  ;;  %s1015_s30 = smov (!%p148_p9), [#allocation2]  }
  0x16   : > { %816 = vmatprep.subr.bf16.mxu0 (!%p148_p9), %v902_v2  ;;  %852 = vmatprep.subr.bf16.mxu1 (!%p148_p9), %v902_v2  ;;  %p920_p11 = scmp.ne.s32.totalorder (!%p148_p9), %s1175_s11, %s919_s29 }
  0x17   : > { %s1258_s26 = smov (!%p175_p10, %s752_s26), 63 }
  0x18   : > { %s753_s4 = sshll.u32 %s1258_s26, 2  ;;  %p921_p12 = pnand %p920_p11, %p1075_p5 }
  0x19   : > { %s1098_s7 = scalar_lea.vmem %s1247_s0, %s753_s4  ;;  %817 = vmatpush3.bf16.msra.mxu0 %v902_v2  ;;  %855 = vmatpush3.bf16.msra.mxu1 %v902_v2  ;;  %s923_s4 = sshll.u32 %s1015_s30, 4  ;;  %s924_s4 = int_to_ptr.vmem [resolvable:$false] %s923_s4 }
  0x1a   : > { %v903_v3 = vld [vmem:[%s1098_s7] sm:$0xff]   ;;  %v904_v4 = vld [vmem:[%s1098_s7 + $0x8] sm:$0xff]   ;;  %v905_v5 = vld [vmem:[%s1098_s7 + $0x10] sm:$0xff]   ;;  %p922_p13 = pneg %p921_p12  ;;  %s925_s5 = scalar_lea.vmem %s924_s4, 32 }
  0x1b   : > { %818 = vmatprep.mubr.msk.bf16.mxu0 %vm317_vm0, %v903_v3  ;;  %v911_v6 = vld [vmem:[%s1098_s7 + $0x40] sm:$0xff]   ;;  %v912_v7 = vld [vmem:[%s1098_s7 + $0x48] sm:$0xff]   ;;  %v913_v8 = vld [vmem:[%s1098_s7 + $0x50] sm:$0xff]   ;;  %p926_p0 = scmp.lt.s32.totalorder %s1175_s11, %s924_s4  ;;  %p927_p1 = scmp.lt.s32.totalorder %s925_s5, %s919_s29 }
  0x1c   : > { %819 = vmatmul.mubr.msk.bf16.vlgmr.msra.gmra.mrb[0].mxu0 %vm317_vm0, %v904_v4  ;;  %834 = vmatprep.mubr.msk.bf16.mxu1 %vm317_vm0, %v911_v6  ;;  %v906_v9 = vld [vmem:[%s1098_s7 + $0x18] sm:$0xff]   ;;  %v907_v10 = vld [vmem:[%s1098_s7 + $0x20] sm:$0xff]   ;;  %v908_v13 = vld [vmem:[%s1098_s7 + $0x28] sm:$0xff]  }
  0x1d   : > { %822 = vmatprep.mubr.msk.bf16.mxu0 %vm317_vm0, %v905_v5  ;;  %835 = vmatmul.mubr.msk.bf16.vlgmr.msra.gmra.mrb[0].mxu1 %vm317_vm0, %v912_v7  ;;  %v914_v11 = vld [vmem:[%s1098_s7 + $0x58] sm:$0xff]   ;;  %v915_v12 = vld [vmem:[%s1098_s7 + $0x60] sm:$0xff]   ;;  %v909_v14 = vld [vmem:[%s1098_s7 + $0x30] sm:$0xff]   ;;  %p928_p2 = por %p927_p1, %p926_p0 }
  0x1e   : > { %838 = vmatprep.mubr.msk.bf16.mxu1 %vm317_vm0, %v913_v8  ;;  %v916_v15 = vld [vmem:[%s1098_s7 + $0x68] sm:$0xff]   ;;  %v917_v16 = vld [vmem:[%s1098_s7 + $0x70] sm:$0xff]   ;;  %v910_v17 = vld [vmem:[%s1098_s7 + $0x38] sm:$0xff]  }
  0x1f   : > { %v918_v18 = vld [vmem:[%s1098_s7 + $0x78] sm:$0xff]   ;;  %p929_p3 = pnand %p928_p2, %p922_p13 }
  0x24   : > { %823 = vmatmul.mubr.msk.bf16.gmra.mrb[4].mxu0 %vm317_vm0, %v906_v9 }
  0x25   : > { %826 = vmatprep.mubr.msk.bf16.mxu0 %vm317_vm0, %v907_v10  ;;  %839 = vmatmul.mubr.msk.bf16.gmra.mrb[4].mxu1 %vm317_vm0, %v914_v11 }
  0x26   : > { %842 = vmatprep.mubr.msk.bf16.mxu1 %vm317_vm0, %v915_v12 }
  0x2c   : > { %827 = vmatmul.mubr.msk.bf16.gmra.mrb[8].mxu0 %vm317_vm0, %v908_v13 }
  0x2d   : > { %830 = vmatprep.mubr.msk.bf16.mxu0 %vm317_vm0, %v909_v14  ;;  %843 = vmatmul.mubr.msk.bf16.gmra.mrb[8].mxu1 %vm317_vm0, %v916_v15 }
  0x2e   : > { %846 = vmatprep.mubr.msk.bf16.mxu1 %vm317_vm0, %v917_v16 }
  0x34   : > { %831 = vmatmul.mubr.msk.bf16.gmra.mrb[12].mxu0 %vm317_vm0, %v910_v17 }
  0x35   : > { %847 = vmatmul.mubr.msk.bf16.gmra.mrb[12].mxu1 %vm317_vm0, %v918_v18 }
  0xef   : > { %v820_v19 = vpop.f32.mrb[0].mxu0 }
  0xf0   : > { %v400_v20 = vpop.f32.mrb[1].mxu0  ;;  %v1132_v26 = vpop.f32.mrb[0].mxu1  ;;  %v567_v28 = vmul.f32 %v820_v19, %v820_v19 }
  0xf1   : > { %v821_v21 = vpop.f32.mrb[2].mxu0  ;;  %v565_v23 = vmul.f32 %v400_v20, %v400_v20  ;;  %v1134_v27 = vpop.f32.mrb[1].mxu1 }
  0xf2   : > { %v403_v22 = vpop.f32.mrb[3].mxu0  ;;  %v1136_v31 = vpop.f32.mrb[2].mxu1  ;;  %v568_v33 = vmul.f32 %v821_v21, %v821_v21 }
  0xf3   : > { %v527_v24 = vadd.f32 %v403_v22, %v400_v20  ;;  %v566_v25 = vmul.f32 %v403_v22, %v403_v22  ;;  %v1138_v32 = vpop.f32.mrb[3].mxu1 }
  0xf5   : > { %v528_v29 = vadd.f32 %v820_v19, %v527_v24  ;;  %v597_v30 = vadd.f32 %v566_v25, %v565_v23 }
  0xf7   : > { %v598_v34 = vadd.f32 %v597_v30, %v567_v28  ;;  %v824_v35 = vpop.f32.mrb[4].mxu0  ;;  %v529_v36 = vadd.f32 %v821_v21, %v528_v29 }
  0xf8   : > { %v416_v37 = vpop.f32.mrb[5].mxu0  ;;  %v1140_v46 = vpop.f32.mrb[4].mxu1  ;;  %v571_v48 = vmul.f32 %v824_v35, %v824_v35 }
  0xf9   : > { %v530_v38 = vadd.f32 %v529_v36, %v416_v37  ;;  %v569_v39 = vmul.f32 %v416_v37, %v416_v37  ;;  %v599_v40 = vadd.f32 %v598_v34, %v568_v33  ;;  %v825_v41 = vpop.f32.mrb[6].mxu0  ;;  %v480_v47 = vpop.f32.mrb[5].mxu1  ;;  %v581_v36 = vmul.f32 %v1134_v27, %v1134_v27 }
  0xfa   : > { %v419_v42 = vpop.f32.mrb[7].mxu0  ;;  %v1142_v51 = vpop.f32.mrb[6].mxu1  ;;  %v572_v53 = vmul.f32 %v825_v41, %v825_v41 }
  0xfb   : > { %v600_v43 = vadd.f32 %v599_v40, %v569_v39  ;;  %v531_v44 = vadd.f32 %v530_v38, %v419_v42  ;;  %v570_v45 = vmul.f32 %v419_v42, %v419_v42  ;;  %v483_v52 = vpop.f32.mrb[7].mxu1  ;;  %v583_v42 = vmul.f32 %v1132_v26, %v1132_v26 }
  0xfd   : > { %v532_v49 = vadd.f32 %v824_v35, %v531_v44  ;;  %v601_v50 = vadd.f32 %v600_v43, %v570_v45  ;;  %v584_v45 = vmul.f32 %v1136_v31, %v1136_v31 }
  0xff   : > { %v602_v54 = vadd.f32 %v601_v50, %v571_v48  ;;  %v828_v55 = vpop.f32.mrb[8].mxu0  ;;  %v533_v56 = vadd.f32 %v825_v41, %v532_v49  ;;  %v582_v41 = vmul.f32 %v1138_v32, %v1138_v32 }
 0x100   : > { %v432_v57 = vpop.f32.mrb[9].mxu0  ;;  %v844_v2 = vpop.f32.mrb[8].mxu1  ;;  %v575_v4 = vmul.f32 %v828_v55, %v828_v55 }
 0x101   : > { %v534_v58 = vadd.f32 %v533_v56, %v432_v57  ;;  %v573_v59 = vmul.f32 %v432_v57, %v432_v57  ;;  %v603_v60 = vadd.f32 %v602_v54, %v572_v53  ;;  %v829_v61 = vpop.f32.mrb[10].mxu0  ;;  %v496_v3 = vpop.f32.mrb[9].mxu1  ;;  %v586_v56 = vmul.f32 %v483_v52, %v483_v52 }
 0x102   : > { %v435_v62 = vpop.f32.mrb[11].mxu0  ;;  %v845_v7 = vpop.f32.mrb[10].mxu1  ;;  %v576_v9 = vmul.f32 %v829_v61, %v829_v61 }
 0x103   : > { %v604_v63 = vadd.f32 %v603_v60, %v573_v59  ;;  %v535_v0 = vadd.f32 %v534_v58, %v435_v62  ;;  %v574_v1 = vmul.f32 %v435_v62, %v435_v62  ;;  %v499_v8 = vpop.f32.mrb[11].mxu1 }
 0x105   : > { %v536_v5 = vadd.f32 %v828_v55, %v535_v0  ;;  %v605_v6 = vadd.f32 %v604_v63, %v574_v1  ;;  %v590_v0 = vmul.f32 %v499_v8, %v499_v8  ;;  %v591_v1 = vmul.f32 %v844_v2, %v844_v2 }
 0x107   : > { %v606_v10 = vadd.f32 %v605_v6, %v575_v4  ;;  %v832_v11 = vpop.f32.mrb[12].mxu0  ;;  %v537_v12 = vadd.f32 %v829_v61, %v536_v5  ;;  %v589_v61 = vmul.f32 %v496_v3, %v496_v3  ;;  %v592_v5 = vmul.f32 %v845_v7, %v845_v7 }
 0x108   : > { %v448_v13 = vpop.f32.mrb[13].mxu0  ;;  %v848_v22 = vpop.f32.mrb[12].mxu1  ;;  %v579_v24 = vmul.f32 %v832_v11, %v832_v11 }
 0x109   : > { %v538_v14 = vadd.f32 %v537_v12, %v448_v13  ;;  %v577_v15 = vmul.f32 %v448_v13, %v448_v13  ;;  %v607_v16 = vadd.f32 %v606_v10, %v576_v9  ;;  %v833_v17 = vpop.f32.mrb[14].mxu0  ;;  %v512_v23 = vpop.f32.mrb[13].mxu1 }
 0x10a   : > { %v451_v18 = vpop.f32.mrb[15].mxu0  ;;  %v849_v29 = vpop.f32.mrb[14].mxu1  ;;  %v580_v33 = vmul.f32 %v833_v17, %v833_v17  ;;  %v593_v9 = vmul.f32 %v512_v23, %v512_v23 }
 0x10b   : > { %v608_v19 = vadd.f32 %v607_v16, %v577_v15  ;;  %v539_v20 = vadd.f32 %v538_v14, %v451_v18  ;;  %v578_v21 = vmul.f32 %v451_v18, %v451_v18  ;;  %v515_v30 = vpop.f32.mrb[15].mxu1  ;;  %v596_v16 = vmul.f32 %v849_v29, %v849_v29 }
 0x10c   : > { %v594_v14 = vmul.f32 %v515_v30, %v515_v30 }
 0x10d   : > { %v540_v25 = vadd.f32 %v832_v11, %v539_v20  ;;  %v609_v28 = vadd.f32 %v608_v19, %v578_v21 }
 0x10f   : > { %v610_v34 = vadd.f32 %v609_v28, %v579_v24  ;;  %v541_v35 = vadd.f32 %v833_v17, %v540_v25 }
 0x111   : > { %v542_v37 = vadd.f32 %v541_v35, %v1134_v27  ;;  %v611_v38 = vadd.f32 %v610_v34, %v580_v33  ;;  %v585_v27 = vmul.f32 %v480_v47, %v480_v47 }
 0x113   : > { %v612_v39 = vadd.f32 %v611_v38, %v581_v36  ;;  %v543_v40 = vadd.f32 %v542_v37, %v1138_v32  ;;  %v587_v32 = vmul.f32 %v1140_v46, %v1140_v46 }
 0x115   : > { %v544_v43 = vadd.f32 %v1132_v26, %v543_v40  ;;  %v613_v44 = vadd.f32 %v612_v39, %v582_v41  ;;  %v588_v26 = vmul.f32 %v1142_v51, %v1142_v51 }
 0x117   : > { %v614_v48 = vadd.f32 %v613_v44, %v583_v42  ;;  %v545_v49 = vadd.f32 %v1136_v31, %v544_v43 }
 0x119   : > { %v546_v50 = vadd.f32 %v545_v49, %v480_v47  ;;  %v615_v53 = vadd.f32 %v614_v48, %v584_v45 }
 0x11b   : > { %v616_v54 = vadd.f32 %v615_v53, %v585_v27  ;;  %v547_v55 = vadd.f32 %v546_v50, %v483_v52 }
 0x11d   : > { %v548_v57 = vadd.f32 %v1140_v46, %v547_v55  ;;  %v617_v58 = vadd.f32 %v616_v54, %v586_v56 }
 0x11f   : > { %v618_v59 = vadd.f32 %v617_v58, %v587_v32  ;;  %v549_v60 = vadd.f32 %v1142_v51, %v548_v57  ;;  %v595_v51 = vmul.f32 %v848_v22, %v848_v22 }
 0x121   : > { %v550_v31 = vadd.f32 %v549_v60, %v496_v3  ;;  %v619_v62 = vadd.f32 %v618_v59, %v588_v26 }
 0x123   : > { %v620_v47 = vadd.f32 %v619_v62, %v589_v61  ;;  %v551_v63 = vadd.f32 %v550_v31, %v499_v8 }
 0x125   : > { %v552_v52 = vadd.f32 %v844_v2, %v551_v63  ;;  %v621_v4 = vadd.f32 %v620_v47, %v590_v0 }
 0x127   : > { %v622_v6 = vadd.f32 %v621_v4, %v591_v1  ;;  %v553_v46 = vadd.f32 %v845_v7, %v552_v52 }
 0x129   : > { %v554_v10 = vadd.f32 %v553_v46, %v512_v23  ;;  %v623_v11 = vadd.f32 %v622_v6, %v592_v5 }
 0x12b   : > { %v624_v12 = vadd.f32 %v623_v11, %v593_v9  ;;  %v555_v13 = vadd.f32 %v554_v10, %v515_v30 }
 0x12d   : > { %v556_v3 = vadd.f32 %v848_v22, %v555_v13  ;;  %v625_v15 = vadd.f32 %v624_v12, %v594_v14 }
 0x12f   : > { %v557_v17 = vadd.f32 %v849_v29, %v556_v3  ;;  %v626_v8 = vadd.f32 %v625_v15, %v595_v51 }
 0x131   : > { %v558_v18 = vrot.slane %v557_v17, 4  ;;  %v627_v2 = vadd.f32 %v626_v8, %v596_v16 }
 0x133   : > { %v559_v7 = vadd.f32 %v558_v18, %v557_v17  ;;  %v628_v19 = vrot.slane %v627_v2, 4 }
 0x135   : > { %v560_v20 = vrot.slane %v559_v7, 2  ;;  %v629_v21 = vadd.f32 %v628_v19, %v627_v2 }
 0x137   : > { %v561_v23 = vadd.f32 %v560_v20, %v559_v7  ;;  %v630_v24 = vrot.slane %v629_v21, 2 }
 0x139   : > { %v562_v22 = vrot.slane %v561_v23, 1  ;;  %v631_v25 = vadd.f32 %v630_v24, %v629_v21 }
 0x13b   : > { %v563_v28 = vadd.f32 %v562_v22, %v561_v23  ;;  %v632_v29 = vrot.slane %v631_v25, 1 }
 0x13d   : > { %564 = vst [vmem:[%s167_s10] sm:$0x1] %v563_v28  ;;  %v633_v30 = vadd.f32 %v632_v29, %v631_v25 }
 0x13e   : > { %932 = shalt.err (!%p929_p3)
}
 0x13f   : > { %s933_s6 = scalar_lea.hbm %s1173_s25, 16  ;;  %s937_s10 = scalar_lea.hbm %s1249_s2, 32 }
 0x140   : > { %p934_p4 = scmp.ne.s32.totalorder %s1173_s25, %s933_s6  ;;  %p938_p9 = scmp.lt.u32.totalorder %s1173_s25, %s1249_s2 }
 0x141   : > { %p939_p10 = scmp.lt.u32.totalorder %s937_s10, %s933_s6  ;;  %p941_p12 = scmp.lt.u32.totalorder %s933_s6, %s1173_s25 }
 0x142   : > { %p935_p7 = pnand %p934_p4, %p1075_p5 }
 0x143   : > { %p940_p11 = por %p939_p10, %p938_p9 }
 0x144   : > { %p936_p8 = pneg %p935_p7 }
 0x145   : > { %p942_p13 = por %p941_p12, %p940_p11 }
 0x147   : > { %p943_p0 = pnand %p942_p13, %p936_p8 }
 0x149   : > { %946 = shalt.err (!%p943_p0)
}
 0x14a   : > { %856 = dma.vmem_to_hbm [thread:$0]  (%p1075_p5), %s1175_s11, 16, %s1173_s25, %s636_s28   ;;  %634 = vst [vmem:[%s173_s17] sm:$0x1] %v633_v30 }
 0x14b   : > { %s640_s16 = scalar_lea.sflag [#allocation5], %s1163_s8  ;;  %s947_s26 = scalar_lea.vmem %s1182_s19, 16 }
 0x14c   : > { %p948_p1 = scmp.ne.s32.totalorder %s1182_s19, %s947_s26  ;;  %s1016_s29 = smov [#allocation4]  }
 0x14d   : > { %s951_s30 = sshll.u32 %s1016_s29, 4  ;;  %s952_s30 = int_to_ptr.vmem [resolvable:$false] %s951_s30 }
 0x14e   : > { %p949_p2 = pnand %p948_p1, %p1075_p5  ;;  %s953_s4 = scalar_lea.vmem %s952_s30, 32 }
 0x14f   : > { %p954_p4 = scmp.lt.s32.totalorder %s1182_s19, %s952_s30  ;;  %p955_p7 = scmp.lt.s32.totalorder %s953_s4, %s947_s26 }
 0x150   : > { %p950_p3 = pneg %p949_p2 }
 0x151   : > { %p956_p8 = por %p955_p7, %p954_p4 }
 0x153   : > { %p957_p9 = pnand %p956_p8, %p950_p3 }
 0x155   : > { %960 = shalt.err (!%p957_p9)
}
 0x156   : > { %s961_s8 = scalar_lea.hbm %s1180_s27, 16  ;;  %s965_s25 = scalar_lea.hbm %s1250_s3, 32 }
 0x157   : > { %p962_p10 = scmp.ne.s32.totalorder %s1180_s27, %s961_s8  ;;  %p966_p13 = scmp.lt.u32.totalorder %s1180_s27, %s1250_s3 }
 0x158   : > { %p967_p0 = scmp.lt.u32.totalorder %s965_s25, %s961_s8  ;;  %p969_p2 = scmp.lt.u32.totalorder %s961_s8, %s1180_s27 }
 0x159   : > { %p963_p11 = pnand %p962_p10, %p1075_p5 }
 0x15a   : > { %p968_p1 = por %p967_p0, %p966_p13 }
 0x15b   : > { %p964_p12 = pneg %p963_p11 }
 0x15c   : > { %p970_p3 = por %p969_p2, %p968_p1 }
 0x15e   : > { %p971_p4 = pnand %p970_p3, %p964_p12 }
 0x160   : > { %974 = shalt.err (!%p971_p4)
}
 0x161   : > { %857 = dma.vmem_to_hbm [thread:$0]  (%p1075_p5), %s1182_s19, 16, %s1180_s27, %s640_s16  }
 0x162 PF: > { %p867_p7 = scmp.ge.s32.totalorder %s1013_s15, 2  ;;  %s677_s6 = sand.u32 1, %s1001_s12  }
 0x163   : > { %s678_s7 = scalar_lea.sflag [#allocation3], %s677_s6 }
 0x164   : > { %p861_p8 = pnand %p867_p7, %p1079_p6 }
 0x166   : > { %992 = dma.done.wait (!%p861_p8), %s678_s7, 16  }
 0x167   : > { %994 = vsyncadd (!%p861_p8), %s678_s7, 4294967280  ;;  %s686_s9 = scalar_lea.sflag [#allocation5], %s677_s6 }
 0x168   : > { %996 = dma.done.wait (!%p861_p8), %s686_s9, 16  }
 0x169   : > { %998 = vsyncadd (!%p861_p8), %s686_s9, 4294967280  ;;  %p17_p5 = scmp.ge.s32.totalorder %s1062_s18, 4   ;;  %s1253_s12 = smov %s1005_s13 }
 0x16a   : > { %s1254_s13 = smov %s1009_s14  ;;  %s1255_s14 = smov %s1073_s21 }
 0x16b   : > { %s1256_s15 = smov %s1062_s18  ;;  %19 = sbr.rel (!%p17_p5) target bundleno = 5 (0x5), region = 80 }
 0x172   :  { %690 = vsyncpa [#allocation3], 1 }
 0x173   :  { %692 = vsyncpa [#allocation3 + $0x1], 1 }
 0x174   :  { %693 = vsyncpa [#allocation5], 1 }
 0x175   :  { %695 = vsyncpa [#allocation5 + $0x1], 1 }

</bundles_post_ra>
